<compile_context>
chip_gen: v7x
topology: tpu7x:2x2x1
jax: 0.10.0
libtpu: 0.0.40
codegen_flags: <defaults>
</compile_context>

<pallas_src>
import jax
import jax.numpy as jnp
from jax.experimental import pallas as pl
from jax.experimental.pallas import tpu as pltpu


GRIDLESS_MAX_BATCH = 4096     # whole-array VMEM path up to this many rows
PER_CORE_MIN_BATCH = 2048     # min rows/core before a parallel grid pays off
DEFAULT_BATCH_TILE = 2048     # single-core tile for very large batches
MAX_BATCH_TILE = 8192         # cap on the one-tile-per-core path


def _round_up(a, m):
    return ((a + m - 1) // m) * m


def _num_tensorcores():
    """Best-effort TensorCores-per-chip (2 on v7x, 1 on v5e/v6e)."""
    try:
        kind = jax.devices()[0].device_kind.lower()
    except Exception:
        return 1
    return 2 if "v7" in kind else 1


def dqn_t_kernel(xT_ref, w1T_ref, b1_ref, w2T_ref, b2_ref, qT_ref, aT_ref):
    """Transposed forward: batch on lanes end-to-end.

    xT  : (d_in, Bt)   w1T : (H, d_in)   b1 : (H, 1)
    w2T : (A, H)       b2  : (A, 1)
    qT  : (A, Bt)      aT  : (1, Bt) int32 greedy action
    """
    xT = xT_ref[...].astype(jnp.float32)                      # (d_in, Bt)
    w1T = w1T_ref[...].astype(jnp.float32)                    # (H, d_in)

    # fc1 + relu: (H, d_in) @ (d_in, Bt) -> (H, Bt), f32 accumulator kept.
    h = jnp.dot(w1T, xT, preferred_element_type=jnp.float32)
    h = jnp.maximum(h + b1_ref[...].astype(jnp.float32), 0.0)

    # fc2: (A, H) @ (H, Bt) -> (A, Bt)
    q = jnp.dot(w2T_ref[...].astype(jnp.float32), h,
                preferred_element_type=jnp.float32)
    q = q + b2_ref[...].astype(jnp.float32)

    q_out = q.astype(qT_ref.dtype)
    qT_ref[...] = q_out                                        # lane-dense store

    # Fused greedy action: argmax over actions (sublane axis), first-index
    # tie-break (matches jnp.argmax / torch.argmax).  Computed on the
    # stored-precision q so it always agrees with the returned q values.
    qf = q_out.astype(jnp.float32)
    n_act = qf.shape[0]
    ids = jax.lax.broadcasted_iota(jnp.int32, qf.shape, 0)
    max_q = jnp.max(qf, axis=0, keepdims=True)
    cand = jnp.where(qf == max_q, ids, n_act)
    aT_ref[...] = jnp.min(cand, axis=0, keepdims=True).astype(jnp.int32)


def linear_dqn_forward(x, w1, b1, w2, b2, *,
                       batch_tile=DEFAULT_BATCH_TILE, force_grid=False):
    """Full forward (fc1 -> relu -> fc2) + fused greedy action in one kernel.

    Weights are (in_features, out_features), i.e. q = relu(x @ w1 + b1) @ w2 + b2.
    Returns (q_values[B, A], greedy_action[B, 1] int32).
    `force_grid` exists for testing the tiled path at small batch sizes.
    """
    B, d_in = x.shape
    H = w1.shape[1]
    A = w2.shape[1]

    # Batch-on-lanes layout (layout plumbing only).
    xT = x.T                       # (d_in, B)
    w1T = w1.T                     # (H, d_in)
    w2T = w2.T                     # (A, H)
    b1c = b1.reshape(H, 1)
    b2c = b2.reshape(A, 1)

    n_cores = _num_tensorcores()
    use_grid = force_grid or (B > GRIDLESS_MAX_BATCH) or (
        n_cores > 1 and B >= n_cores * PER_CORE_MIN_BATCH)

    if not use_grid:
        # Gridless whole-array VMEM path: single DMA per operand, no software
        # pipeline, no per-step grid overhead.  Footprint <1 MB at B=4096.
        vmem = pltpu.MemorySpace.VMEM
        qT, aT = pl.pallas_call(
            dqn_t_kernel,
            out_shape=(jax.ShapeDtypeStruct((A, B), x.dtype),
                       jax.ShapeDtypeStruct((1, B), jnp.int32)),
            in_specs=[pl.BlockSpec(memory_space=vmem)] * 5,
            out_specs=(pl.BlockSpec(memory_space=vmem),
                       pl.BlockSpec(memory_space=vmem)),
        )(xT, w1T, b1c, w2T, b2c)
        return qT.T, aT.reshape(B, 1)

    # Tiled path.  On v7x: exactly one maximal tile per TensorCore (2 steps,
    # both run in parallel).  Otherwise: a large fixed tile so VMEM stays flat
    # no matter how big the replay batch is.
    if n_cores > 1 and B <= n_cores * MAX_BATCH_TILE:
        tile = min(MAX_BATCH_TILE, _round_up(pl.cdiv(B, n_cores), 128))
    else:
        tile = min(MAX_BATCH_TILE, _round_up(batch_tile, 128))

    Bp = _round_up(B, tile)
    if Bp != B:
        # Pad the batch-lane axis; padded columns are computed then discarded.
        xT = jnp.pad(xT, ((0, 0), (0, Bp - B)))
    grid = (Bp // tile,)

    qT, aT = pl.pallas_call(
        dqn_t_kernel,
        out_shape=(jax.ShapeDtypeStruct((A, Bp), x.dtype),
                   jax.ShapeDtypeStruct((1, Bp), jnp.int32)),
        grid=grid,
        in_specs=[
            pl.BlockSpec((d_in, tile), lambda i: (0, i)),
            pl.BlockSpec((H, d_in), lambda i: (0, 0)),
            pl.BlockSpec((H, 1), lambda i: (0, 0)),
            pl.BlockSpec((A, H), lambda i: (0, 0)),
            pl.BlockSpec((A, 1), lambda i: (0, 0)),
        ],
        out_specs=(
            pl.BlockSpec((A, tile), lambda i: (0, i)),
            pl.BlockSpec((1, tile), lambda i: (0, i)),
        ),
        compiler_params=pltpu.CompilerParams(
            dimension_semantics=("parallel",)),
    )(xT, w1T, b1c, w2T, b2c)

    return qT[:, :B].T, aT[:, :B].reshape(B, 1)


def init_params(key, in_dims, hidden, n_actions, dtype=jnp.float32):
    """Deterministic init matching nn.Linear default: U(-1/sqrt(fan_in), +)."""
    k1, k2, k3, k4 = jax.random.split(key, 4)
    bound1 = 1.0 / jnp.sqrt(in_dims)
    bound2 = 1.0 / jnp.sqrt(hidden)
    w1 = jax.random.uniform(k1, (in_dims, hidden), dtype, -bound1, bound1)
    b1 = jax.random.uniform(k2, (hidden,), dtype, -bound1, bound1)
    w2 = jax.random.uniform(k3, (hidden, n_actions), dtype, -bound2, bound2)
    b2 = jax.random.uniform(k4, (n_actions,), dtype, -bound2, bound2)
    return w1, b1, w2, b2


if __name__ == "__main__":
    # CartPole-v1: observation dim 4, 2 actions; hidden layer of 128.
    batch, in_dims, hidden, n_actions = 8, 4, 128, 2

    key = jax.random.PRNGKey(0)
    k_x, k_p, k_xl = jax.random.split(key, 3)
    x = jax.random.normal(k_x, (batch, in_dims), jnp.float32)
    w1, b1, w2, b2 = init_params(k_p, in_dims, hidden, n_actions)

    # Small-batch (gridless, VMEM-resident) path.
    q, act = linear_dqn_forward(x, w1, b1, w2, b2)
    q, act = jax.block_until_ready((q, act))

    ref_q = jnp.maximum(x @ w1 + b1, 0.0) @ w2 + b2
    assert q.shape == (batch, n_actions) and act.shape == (batch, 1)
    assert jnp.allclose(q, ref_q, atol=1e-5, rtol=1e-5)
    assert jnp.array_equal(
        act, jnp.argmax(q, axis=-1).reshape(-1, 1).astype(jnp.int32))

    # Non-divisible replay batch forced through the tiled (grid + padded last
    # tile) path to exercise the lane-dense transposed stores.
    xl = jax.random.normal(k_xl, (300, in_dims), jnp.float32)
    ql, actl = linear_dqn_forward(xl, w1, b1, w2, b2,
                                  batch_tile=128, force_grid=True)
    ql, actl = jax.block_until_ready((ql, actl))
    ref_ql = jnp.maximum(xl @ w1 + b1, 0.0) @ w2 + b2
    assert ql.shape == (300, n_actions) and actl.shape == (300, 1)
    assert jnp.allclose(ql, ref_ql, atol=1e-5, rtol=1e-5)
    assert jnp.array_equal(
        actl, jnp.argmax(ql, axis=-1).reshape(-1, 1).astype(jnp.int32))

    print("KERNEL_OK")
</pallas_src>

<mosaic_0001>
module attributes {stable_mosaic.version = 11 : i64} {
  func.func @dqn_t_kernel(%arg0: memref<4x8xf32, #tpu.memory_space<vmem>>, %arg1: memref<128x4xf32, #tpu.memory_space<vmem>>, %arg2: memref<128x1xf32, #tpu.memory_space<vmem>>, %arg3: memref<2x128xf32, #tpu.memory_space<vmem>>, %arg4: memref<2x1xf32, #tpu.memory_space<vmem>>, %arg5: memref<2x8xf32, #tpu.memory_space<vmem>>, %arg6: memref<1x8xi32, #tpu.memory_space<vmem>>) attributes {dimension_semantics = [], scalar_prefetch = 0 : i64, scratch_operands = 0 : i64, tpu.core_type = #tpu.core_type<tc>} {
    %c0 = arith.constant 0 : index
    %c0_0 = arith.constant 0 : index
    %0 = vector.load %arg0[%c0, %c0_0] : memref<4x8xf32, #tpu.memory_space<vmem>>, vector<4x8xf32>
    %c0_1 = arith.constant 0 : index
    %c0_2 = arith.constant 0 : index
    %1 = vector.load %arg1[%c0_1, %c0_2] : memref<128x4xf32, #tpu.memory_space<vmem>>, vector<128x4xf32>
    %cst = arith.constant dense<0.000000e+00> : vector<128x8xf32>
    %2 = tpu.matmul %1, %0, %cst {dimension_numbers = #tpu.dot_dimension_numbers<[1], [0], [0], [1], [0, 0, 1, 1], [], []>} : vector<128x4xf32>, vector<4x8xf32>, vector<128x8xf32> -> vector<128x8xf32>
    %c0_3 = arith.constant 0 : index
    %c0_4 = arith.constant 0 : index
    %3 = vector.load %arg2[%c0_3, %c0_4] : memref<128x1xf32, #tpu.memory_space<vmem>>, vector<128x1xf32>
    %4 = vector.broadcast %3 : vector<128x1xf32> to vector<128x8xf32>
    %5 = arith.addf %2, %4 : vector<128x8xf32>
    %cst_5 = arith.constant 0.000000e+00 : f32
    %6 = vector.broadcast %cst_5 : f32 to vector<128x8xf32>
    %7 = arith.maximumf %5, %6 : vector<128x8xf32>
    %c0_6 = arith.constant 0 : index
    %c0_7 = arith.constant 0 : index
    %8 = vector.load %arg3[%c0_6, %c0_7] : memref<2x128xf32, #tpu.memory_space<vmem>>, vector<2x128xf32>
    %cst_8 = arith.constant dense<0.000000e+00> : vector<2x8xf32>
    %9 = tpu.matmul %8, %7, %cst_8 {dimension_numbers = #tpu.dot_dimension_numbers<[1], [0], [0], [1], [0, 0, 1, 1], [], []>} : vector<2x128xf32>, vector<128x8xf32>, vector<2x8xf32> -> vector<2x8xf32>
    %c0_9 = arith.constant 0 : index
    %c0_10 = arith.constant 0 : index
    %10 = vector.load %arg4[%c0_9, %c0_10] : memref<2x1xf32, #tpu.memory_space<vmem>>, vector<2x1xf32>
    %11 = vector.broadcast %10 : vector<2x1xf32> to vector<2x8xf32>
    %12 = arith.addf %9, %11 : vector<2x8xf32>
    %c0_11 = arith.constant 0 : index
    %c0_12 = arith.constant 0 : index
    %13 = vector.load %arg5[%c0_11, %c0_12] : memref<2x8xf32, #tpu.memory_space<vmem>>, vector<2x8xf32>
    tpu.vector_store %arg5[%c0_11, %c0_12], %12 {strides = array<i32>} : memref<2x8xf32, #tpu.memory_space<vmem>>, vector<2x8xf32>,
    %14 = tpu.iota {dimensions = array<i32: 0>} : vector<2x8xi32>
    %cst_13 = arith.constant dense<0xFF800000> : vector<8xf32>
    %15 = vector.multi_reduction <maximumf>, %12, %cst_13 [0] : vector<2x8xf32> to vector<8xf32>
    %16 = vector.shape_cast %15 : vector<8xf32> to vector<1x8xf32>
    %17 = vector.broadcast %16 : vector<1x8xf32> to vector<2x8xf32>
    %18 = arith.cmpf oeq, %12, %17 : vector<2x8xf32>
    %c2_i32 = arith.constant 2 : i32
    %19 = vector.broadcast %c2_i32 : i32 to vector<2x8xi32>
    %20 = arith.select %18, %14, %19 : vector<2x8xi1>, vector<2x8xi32>
    %cst_14 = arith.constant dense<2147483647> : vector<8xi32>
    %21 = vector.multi_reduction <minsi>, %20, %cst_14 [0] : vector<2x8xi32> to vector<8xi32>
    %22 = vector.shape_cast %21 : vector<8xi32> to vector<1x8xi32>
    %c0_15 = arith.constant 0 : index
    %c0_16 = arith.constant 0 : index
    %23 = vector.load %arg6[%c0_15, %c0_16] : memref<1x8xi32, #tpu.memory_space<vmem>>, vector<1x8xi32>
    tpu.vector_store %arg6[%c0_15, %c0_16], %22 {strides = array<i32>} : memref<1x8xi32, #tpu.memory_space<vmem>>, vector<1x8xi32>,
    return
  }
}

</mosaic_0001>

<bundles_post_ra>
// kernel: tpu_custom_call.1
= control target key start
LH: loop header
LB: loop body
LE: loop exit
PB: predicated region body
PF: predicated region fallthrough
CT: control target
= control target key end

     0   :  { %12 = vsyncpa [#allocation3], 0  ;;  %vm186_vm0 = vcmask 1043456   ;;  %vm137_vm1 = vcmask 31744   ;;  %v673_v4 = vmov 0   ;;  %s870_s0 = inlined_call_operand.vmem [shape: f32[4,8], index: 0, kind: input, shape index: {}]   ;;  %s871_s1 = inlined_call_operand.vmem [shape: f32[128,4], index: 1, kind: input, shape index: {}]   ;;  %s872_s2 = inlined_call_operand.vmem [shape: f32[128,1], index: 2, kind: input, shape index: {}]   ;;  %s873_s3 = inlined_call_operand.vmem [shape: f32[2,128], index: 3, kind: input, shape index: {}]   ;;  %s874_s4 = inlined_call_operand.vmem [shape: f32[2,1], index: 4, kind: input, shape index: {}]   ;;  %s875_s5 = inlined_call_operand.hbm [shape: f32[2,8], index: 5, kind: output, shape index: {0}]   ;;  %s876_s6 = inlined_call_operand.hbm [shape: s32[1,8], index: 6, kind: output, shape index: {1}]  }
   0x1   :  { %v24_v0 = vld [vmem:[%s870_s0] sm:$0xf]  ;;  %v26_v2 = vld [vmem:[%s871_s1 + $0x8] sm:$0xff]  ;;  %v27_v3 = vld [vmem:[%s871_s1 + $0x10] sm:$0xff]  ;;  %623 = vset.pattern.permute.xlu0 %v673_v4  ;;  %624 = vset.pattern.permute.xlu1 %v673_v4 }
   0x2   :  { %v25_v1 = vld [vmem:[%s871_s1] sm:$0xff]  ;;  %532 = vmatprep.subr.msk.mxu0 %vm186_vm0, %v24_v0  ;;  %v28_v5 = vld [vmem:[%s871_s1 + $0x18] sm:$0xff]  ;;  %v43_v8 = vld [vmem:[%s872_s2 + $0x10] sm:$0xff] }
   0x3   :  { %534 = vmatprep.mubr.msk.f32.mxu0 %vm137_vm1, %v25_v1  ;;  %533 = vmatpush3.msk.msra.mxu0 %vm186_vm0, %v24_v0  ;;  %v29_v6 = vld [vmem:[%s871_s1 + $0x20] sm:$0xff]  ;;  %v42_v9 = vld [vmem:[%s872_s2 + $0x8] sm:$0xff]  ;;  %v44_v11 = vld [vmem:[%s872_s2 + $0x18] sm:$0xff] }
   0x4   :  { %535 = vmatmul.mubr.msk.f32.vlgmr.msra.gmra.mrb[0].mxu0 %vm137_vm1, %v26_v2  ;;  %v41_v7 = vld [vmem:[%s872_s2] sm:$0xff]  ;;  %69 = vperm.xlu1 %624, %v43_v8   ;;  %v30_v10 = vld [vmem:[%s871_s1 + $0x28] sm:$0xff]  ;;  %v31_v12 = vld [vmem:[%s871_s1 + $0x30] sm:$0xff] }
   0x5   :  { %537 = vmatprep.mubr.msk.f32.mxu0 %vm137_vm1, %v27_v3  ;;  %59 = vperm.xlu0 %623, %v41_v7   ;;  %v45_v13 = vld [vmem:[%s872_s2 + $0x20] sm:$0xff] }
   0x8   :  { %538 = vmatmul.mubr.msk.f32.gmra.mrb[2].mxu0 %vm137_vm1, %v28_v5  ;;  %74 = vperm.xlu1 %624, %v44_v11  }
   0x9   :  { %540 = vmatprep.mubr.msk.f32.mxu0 %vm137_vm1, %v29_v6  ;;  %64 = vperm.xlu0 %623, %v42_v9  }
   0xc   :  { %541 = vmatmul.mubr.msk.f32.gmra.mrb[4].mxu0 %vm137_vm1, %v30_v10 }
   0xd   :  { %13 = vsyncpa [#allocation5], 0  ;;  %543 = vmatprep.mubr.msk.f32.mxu0 %vm137_vm1, %v31_v12  ;;  %v32_v14 = vld [vmem:[%s871_s1 + $0x38] sm:$0xff]  ;;  %v46_v15 = vld [vmem:[%s872_s2 + $0x28] sm:$0xff]  ;;  %79 = vperm.xlu0 %623, %v45_v13   ;;  %v674_v35 = vmov 0.0|0.0   ;;  %vm675_vm2 = vmmov 0  }
   0xe   :  { %v33_v16 = vld [vmem:[%s871_s1 + $0x40] sm:$0xff]  ;;  %v47_v17 = vld [vmem:[%s872_s2 + $0x30] sm:$0xff]  ;;  %84 = vperm.xlu1 %624, %v46_v15   ;;  %v34_v18 = vld [vmem:[%s871_s1 + $0x48] sm:$0xff]  ;;  %593 = vmatprep.subr.bf16.mxu1 %v674_v35  ;;  %v676_v36 = vmov 0.0   ;;  %vm428_vm3 = vcmask 58368  }
   0xf   :  { %v48_v19 = vld [vmem:[%s872_s2 + $0x38] sm:$0xff]  ;;  %v35_v20 = vld [vmem:[%s871_s1 + $0x50] sm:$0xff]  ;;  %v49_v21 = vld [vmem:[%s872_s2 + $0x40] sm:$0xff]  ;;  %590 = vmatprep.mubr.msk.f32.mxu1 %vm675_vm2, %v676_v36 }
  0x10   :  { %544 = vmatmul.mubr.msk.f32.gmra.mrb[6].mxu0 %vm137_vm1, %v32_v14  ;;  %v36_v22 = vld [vmem:[%s871_s1 + $0x58] sm:$0xff]  ;;  %v50_v23 = vld [vmem:[%s872_s2 + $0x48] sm:$0xff]  ;;  %v37_v24 = vld [vmem:[%s871_s1 + $0x60] sm:$0xff] }
  0x11   :  { %546 = vmatprep.mubr.msk.f32.mxu0 %vm137_vm1, %v33_v16  ;;  %89 = vperm.xlu0 %623, %v47_v17   ;;  %v51_v25 = vld [vmem:[%s872_s2 + $0x50] sm:$0xff]  ;;  %v38_v26 = vld [vmem:[%s871_s1 + $0x68] sm:$0xff]  ;;  %v52_v27 = vld [vmem:[%s872_s2 + $0x58] sm:$0xff] }
  0x12   :  { %94 = vperm.xlu1 %624, %v48_v19   ;;  %v39_v28 = vld [vmem:[%s871_s1 + $0x70] sm:$0xff]  ;;  %v53_v29 = vld [vmem:[%s872_s2 + $0x60] sm:$0xff]  ;;  %v40_v30 = vld [vmem:[%s871_s1 + $0x78] sm:$0xff] }
  0x13   :  { %v54_v31 = vld [vmem:[%s872_s2 + $0x68] sm:$0xff]  ;;  %v55_v32 = vld [vmem:[%s872_s2 + $0x70] sm:$0xff]  ;;  %v56_v33 = vld [vmem:[%s872_s2 + $0x78] sm:$0xff] }
  0x14   :  { %547 = vmatmul.mubr.msk.f32.gmra.mrb[8].mxu0 %vm137_vm1, %v34_v18  ;;  %v352_v34 = vld [vmem:[%s874_s4] sm:$0x3]  ;;  %s677_s4 = smov [#allocation2]  }
  0x15   :  { %549 = vmatprep.mubr.msk.f32.mxu0 %vm137_vm1, %v35_v20  ;;  %99 = vperm.xlu0 %623, %v49_v21   ;;  %s459_s14 = sshll.u32 %s677_s4, 4  ;;  %s460_s14 = int_to_ptr.vmem [resolvable:$true] %s459_s14 }
  0x16   :  { %104 = vperm.xlu1 %624, %v50_v23   ;;  %s625_s15 = scalar_lea.vmem %s460_s14, 32  ;;  %p630_p1 = scmp.lt.s32.totalorder %s460_s14, %s460_s14 }
  0x17   :  { %p626_p0 = scmp.ne.s32.totalorder %s460_s14, %s625_s15  ;;  %p631_p2 = scmp.lt.s32.totalorder %s625_s15, %s625_s15 }
  0x18   :  { %550 = vmatmul.mubr.msk.f32.gmra.mrb[10].mxu0 %vm137_vm1, %v36_v22 }
  0x19   :  { %552 = vmatprep.mubr.msk.f32.mxu0 %vm137_vm1, %v37_v24  ;;  %109 = vperm.xlu0 %623, %v51_v25   ;;  %p632_p3 = por %p631_p2, %p630_p1 }
  0x1a   :  { %114 = vperm.xlu1 %624, %v52_v27  }
  0x1b   :  { %p633_p4 = pnand %p632_p3, %p626_p0 }
  0x1c   :  { %553 = vmatmul.mubr.msk.f32.gmra.mrb[12].mxu0 %vm137_vm1, %v38_v26 }
  0x1d   :  { %555 = vmatprep.mubr.msk.f32.mxu0 %vm137_vm1, %v39_v28  ;;  %119 = vperm.xlu0 %623, %v53_v29  }
  0x1e   :  { %124 = vperm.xlu1 %624, %v54_v31  }
  0x20   :  { %556 = vmatmul.mubr.msk.f32.gmra.mrb[14].mxu0 %vm137_vm1, %v40_v30 }
  0x21   :  { %129 = vperm.xlu0 %623, %v55_v32  }
  0x22   :  { %134 = vperm.xlu1 %624, %v56_v33  }
  0x25   :  { %355 = vperm.xlu0 %623, %v352_v34  }
  0x83   :  { %v70_v37 = vpop.permute.xlu1 %69 }
  0x84   :  { %v60_v38 = vpop.permute.xlu0 %59 }
  0x87   :  { %v75_v39 = vpop.permute.xlu1 %74 }
  0x88   :  { %v65_v40 = vpop.permute.xlu0 %64 }
  0x8c   :  { %v80_v42 = vpop.permute.xlu0 %79 }
  0x8d   :  { %v85_v41 = vpop.permute.xlu1 %84 }
  0x90   :  { %v90_v51 = vpop.permute.xlu0 %89 }
  0x91   :  { %v95_v48 = vpop.permute.xlu1 %94 }
  0x94   :  { %v100_v0 = vpop.permute.xlu0 %99 }
  0x95   :  { %v105_v61 = vpop.permute.xlu1 %104 }
  0x98   :  { %v110_v12 = vpop.permute.xlu0 %109 }
  0x99   :  { %v115_v9 = vpop.permute.xlu1 %114 }
  0x9c   :  { %v120_v25 = vpop.permute.xlu0 %119 }
  0x9d   :  { %v125_v22 = vpop.permute.xlu1 %124 }
  0xa1   :  { %v135_v34 = vpop.permute.xlu1 %134 }
  0xd7   :  { %v536_v43 = vpop.f32.mrb[0].mxu0 }
  0xd8   :  { %v262_v44 = vadd.f32 %v536_v43, %v65_v40  ;;  %v256_v45 = vpop.f32.mrb[1].mxu0 }
  0xd9   :  { %v257_v46 = vadd.f32 %v256_v45, %v60_v38  ;;  %v130_v38 = vpop.permute.xlu0 %129 }
  0xda   :  { %v336_v47 = vmax.f32 %v262_v44, 0.0 }
  0xdb   :  { %v335_v49 = vmax.f32 %v257_v46, 0.0  ;;  %v539_v50 = vpop.f32.mrb[2].mxu0  ;;  %v351_v46 = vld [vmem:[%s873_s3] sm:$0x3] }
  0xdc   :  { %v272_v52 = vadd.f32 %v539_v50, %v75_v39  ;;  %v266_v53 = vpop.f32.mrb[3].mxu0 }
  0xdd   :  { %v267_v54 = vadd.f32 %v266_v53, %v70_v37  ;;  %v594_v55 = vpack.c.bf16 %v336_v47, %v335_v49  ;;  %v356_v47 = vpop.permute.xlu0 %355 }
  0xde   :  { %v338_v56 = vmax.f32 %v272_v52, 0.0 }
  0xdf   :  { %v337_v57 = vmax.f32 %v267_v54, 0.0  ;;  %v542_v58 = vpop.f32.mrb[4].mxu0  ;;  %595 = vmatpush3.bf16.msra.mxu1 %v594_v55 }
  0xe0   :  { %v282_v59 = vadd.f32 %v542_v58, %v85_v41  ;;  %v276_v60 = vpop.f32.mrb[5].mxu0  ;;  %596 = vmatprep.subr.bf16.mxu1 %v674_v35 }
  0xe1   :  { %v597_v62 = vpack.c.bf16 %v338_v56, %v337_v57  ;;  %v277_v63 = vadd.f32 %v276_v60, %v80_v42 }
  0xe2   :  { %v340_v1 = vmax.f32 %v282_v59, 0.0 }
  0xe3   :  { %v339_v2 = vmax.f32 %v277_v63, 0.0  ;;  %v545_v3 = vpop.f32.mrb[6].mxu0  ;;  %598 = vmatpush3.bf16.msra.mxu1 %v597_v62 }
  0xe4   :  { %v292_v4 = vadd.f32 %v545_v3, %v95_v48  ;;  %v286_v5 = vpop.f32.mrb[7].mxu0  ;;  %599 = vmatprep.subr.bf16.mxu1 %v674_v35 }
  0xe5   :  { %v600_v6 = vpack.c.bf16 %v340_v1, %v339_v2  ;;  %v287_v7 = vadd.f32 %v286_v5, %v90_v51 }
  0xe6   :  { %v342_v8 = vmax.f32 %v292_v4, 0.0 }
  0xe7   :  { %v341_v10 = vmax.f32 %v287_v7, 0.0  ;;  %v548_v11 = vpop.f32.mrb[8].mxu0  ;;  %601 = vmatpush3.bf16.msra.mxu1 %v600_v6 }
  0xe8   :  { %v302_v13 = vadd.f32 %v548_v11, %v105_v61  ;;  %v296_v14 = vpop.f32.mrb[9].mxu0  ;;  %602 = vmatprep.subr.bf16.mxu1 %v674_v35 }
  0xe9   :  { %v603_v15 = vpack.c.bf16 %v342_v8, %v341_v10  ;;  %v297_v16 = vadd.f32 %v296_v14, %v100_v0 }
  0xea   :  { %v344_v17 = vmax.f32 %v302_v13, 0.0 }
  0xeb   :  { %v343_v18 = vmax.f32 %v297_v16, 0.0  ;;  %v551_v19 = vpop.f32.mrb[10].mxu0  ;;  %604 = vmatpush3.bf16.msra.mxu1 %v603_v15 }
  0xec   :  { %v312_v20 = vadd.f32 %v551_v19, %v115_v9  ;;  %v306_v21 = vpop.f32.mrb[11].mxu0  ;;  %605 = vmatprep.subr.bf16.mxu1 %v674_v35 }
  0xed   :  { %v606_v23 = vpack.c.bf16 %v344_v17, %v343_v18  ;;  %v307_v24 = vadd.f32 %v306_v21, %v110_v12 }
  0xee   :  { %v346_v26 = vmax.f32 %v312_v20, 0.0 }
  0xef   :  { %v345_v27 = vmax.f32 %v307_v24, 0.0  ;;  %v554_v28 = vpop.f32.mrb[12].mxu0  ;;  %607 = vmatpush3.bf16.msra.mxu1 %v606_v23 }
  0xf0   :  { %v322_v29 = vadd.f32 %v554_v28, %v125_v22  ;;  %v316_v30 = vpop.f32.mrb[13].mxu0  ;;  %608 = vmatprep.subr.bf16.mxu1 %v674_v35 }
  0xf1   :  { %v609_v31 = vpack.c.bf16 %v346_v26, %v345_v27  ;;  %v317_v32 = vadd.f32 %v316_v30, %v120_v25 }
  0xf2   :  { %v348_v33 = vmax.f32 %v322_v29, 0.0 }
  0xf3   :  { %v347_v36 = vmax.f32 %v317_v32, 0.0  ;;  %v557_v37 = vpop.f32.mrb[14].mxu0  ;;  %610 = vmatpush3.bf16.msra.mxu1 %v609_v31 }
  0xf4   :  { %v332_v39 = vadd.f32 %v557_v37, %v135_v34  ;;  %v326_v40 = vpop.f32.mrb[15].mxu0  ;;  %611 = vmatprep.subr.bf16.mxu1 %v674_v35 }
  0xf5   :  { %v612_v41 = vpack.c.bf16 %v348_v33, %v347_v36  ;;  %v327_v42 = vadd.f32 %v326_v40, %v130_v38 }
  0xf6   :  { %v350_v43 = vmax.f32 %v332_v39, 0.0 }
  0xf7   :  { %v349_v44 = vmax.f32 %v327_v42, 0.0  ;;  %613 = vmatpush3.bf16.msra.mxu1 %v612_v41 }
  0xf8   :  { %614 = vmatprep.subr.bf16.mxu1 %v674_v35 }
  0xf9   :  { %v615_v45 = vpack.c.bf16 %v350_v43, %v349_v44 }
  0xfb   :  { %616 = vmatpush3.bf16.msra.mxu1 %v615_v45 }
  0xfe   :  { %591 = vmatmul.mubr.f32.vlgmr.msra.gmra.mrb[0].mxu1 %v351_v46 }
 0x1d1   :  { %v424_v48 = vpop.f32.mrb[0].mxu1 }
 0x1d2   :  { %v425_v49 = vadd.f32 %v424_v48, %v356_v47  ;;  %v592_v50 = vpop.f32.mrb[1].mxu1 }
 0x1d4   :  { %429 = vst.msk [vmem:[#allocation2] sm:$0x3] %vm428_vm3, %v425_v49  ;;  %v432_v51 = vsel %vm428_vm3, %v425_v49, -inf }
 0x1d5   :  { %v433_v35 = vrot.slane %v432_v51, 4 }
 0x1d6   :  { %636 = shalt.err (!%p633_p4)
}
 0x1d7   :  { %s637_s17 = scalar_lea.hbm %s875_s5, 32 }
 0x1d8   :  { %p638_p5 = scmp.ne.s32.totalorder %s875_s5, %s637_s17  ;;  %p641_p6 = scmp.lt.u32.totalorder %s637_s17, %s875_s5 }
 0x1da   :  { %p643_p7 = pnand %p641_p6, %p638_p5 }
 0x1dc   :  { %646 = shalt.err (!%p643_p7)
}
 0x1dd   :  { %462 = dma.vmem_to_hbm [thread:$0]  %s460_s14, 32, %s875_s5, [#allocation3]   ;;  %v434_v52 = vmax.f32 %v432_v51, %v433_v35  ;;  %v430_v54 = vlaneseq  ;;  %vm451_vm7 = vcmask 57344  }
 0x1de   :  { %s678_s24 = smov [#allocation4]  }
 0x1df   :  { %v435_v53 = vrot.slane %v434_v52, 2  ;;  %v431_v57 = vshrl.u32 %v430_v54, 7  ;;  %s469_s25 = sshll.u32 %s678_s24, 4  ;;  %s470_s25 = int_to_ptr.vmem [resolvable:$true] %s469_s25 }
 0x1e0   :  { %s647_s5 = scalar_lea.vmem %s470_s25, 16  ;;  %s651_s26 = scalar_lea.vmem %s470_s25, 32 }
 0x1e1   :  { %v436_v55 = vmax.f32 %v434_v52, %v435_v53  ;;  %p648_p8 = scmp.ne.s32.totalorder %s470_s25, %s647_s5  ;;  %p652_p9 = scmp.lt.s32.totalorder %s470_s25, %s470_s25 }
 0x1e2   :  { %p653_p10 = scmp.lt.s32.totalorder %s651_s26, %s647_s5 }
 0x1e3   :  { %v437_v56 = vrot.slane %v436_v55, 1 }
 0x1e4   :  { %p654_p11 = por %p653_p10, %p652_p9 }
 0x1e5   :  { %v438_v58 = vmax.f32 %v436_v55, %v437_v56 }
 0x1e6   :  { %p655_p12 = pnand %p654_p11, %p648_p8 }
 0x1e7   :  { %vm439_vm4 = vcmp.eq.f32.partialorder %v425_v49, %v438_v58 }
 0x1e8   :  { %v440_v59 = vsel %vm439_vm4, %v431_v57, 2 }
 0x1e9   :  { %v441_v60 = vsel %vm428_vm3, %v440_v59, 2147483647 }
 0x1ea   :  { %v442_v61 = vrot.slane %v441_v60, 4 }
 0x1ec   :  { %vm443_vm5 = vcmp.lt.s32.totalorder %v441_v60, %v442_v61 }
 0x1ed   :  { %v444_v62 = vsel %vm443_vm5, %v441_v60, %v442_v61 }
 0x1ee   :  { %v445_v63 = vrot.slane %v444_v62, 2 }
 0x1f0   :  { %vm446_vm6 = vcmp.lt.s32.totalorder %v444_v62, %v445_v63 }
 0x1f1   :  { %v447_v0 = vsel %vm446_vm6, %v444_v62, %v445_v63 }
 0x1f2   :  { %v448_v1 = vrot.slane %v447_v0, 1 }
 0x1f4   :  { %vm449_vm8 = vcmp.lt.s32.totalorder %v447_v0, %v448_v1 }
 0x1f5   :  { %v450_v2 = vsel %vm449_vm8, %v447_v0, %v448_v1 }
 0x1f6   :  { %452 = vst.msk [vmem:[#allocation4] sm:$0x1] %vm451_vm7, %v450_v2 }
 0x1f7   :  { %658 = shalt.err (!%p655_p12)
}
 0x1f8   :  { %s659_s0 = scalar_lea.hbm %s876_s6, 16 }
 0x1f9   :  { %p660_p13 = scmp.ne.s32.totalorder %s876_s6, %s659_s0  ;;  %p663_p0 = scmp.lt.u32.totalorder %s659_s0, %s876_s6 }
 0x1fb   :  { %p665_p1 = pnand %p663_p0, %p660_p13 }
 0x1fd   :  { %668 = shalt.err (!%p665_p1)
}
 0x1fe   :  { %472 = dma.vmem_to_hbm [thread:$0]  %s470_s25, 16, %s876_s6, [#allocation5]  }
 0x1ff   :  { %669 = dma.done.wait [#allocation3], 32  }
 0x200   :  { %670 = vsyncadd [#allocation3], 4294967264 }
 0x201   :  { %671 = dma.done.wait [#allocation5], 16  }
 0x202   :  { %672 = vsyncadd [#allocation5], 4294967280 }
 0x203   :  { %479 = vsyncpa [#allocation3], 1 }
 0x204   :  { %480 = vsyncpa [#allocation5], 1 }

</bundles_post_ra>
